<compile_context>
chip_gen: v5e
topology: v5e:2x2
jax: 0.10.0
libtpu: 0.0.40
codegen_flags: <defaults>
</compile_context>

<pallas_src>
import functools

import jax
import jax.numpy as jnp
from jax.experimental import pallas as pl
from jax.experimental.pallas import tpu as pltpu


def _round_up(x: int, m: int) -> int:
    return ((x + m - 1) // m) * m


def _round_down(x: int, m: int) -> int:
    return (x // m) * m


def _unhinged_kernel(x_ref, t_ref, o_ref, *, n_valid: int):
    """Write this tile's partial sum of (1 - softmax(x)[row, t[row]])."""
    i = pl.program_id(0)

    x = x_ref[...].astype(jnp.float32)   # (tile_n, C); upcast in-kernel (bf16 HBM ok)
    t = t_ref[...]                       # (tile_n, 1) int32
    tile_n = x.shape[0]

    # Numerically stable softmax pieces -- no full-tile division.
    m = jnp.max(x, axis=1, keepdims=True)                           # (tile_n, 1)
    e = jnp.exp(x - m)                                              # (tile_n, C)
    s = jnp.sum(e, axis=1, keepdims=True)                           # (tile_n, 1)

    # Gather exp(x_t - m) with a select (no float one-hot / extra exp).
    # NOTE: targets are assumed to lie in [0, C); an out-of-range target makes
    # e_t = 0 silently instead of raising like torch fancy indexing would.
    col = jax.lax.broadcasted_iota(jnp.int32, x.shape, 1)           # (tile_n, C)
    e_t = jnp.sum(jnp.where(col == t, e, 0.0), axis=1, keepdims=True)
    p_t = e_t * pl.reciprocal(s, approx=False)                      # (tile_n, 1)

    # Rows past the true batch size (ragged last block) are dropped with a
    # boolean select so stale/NaN VMEM contents cannot poison the sum.
    row = jax.lax.broadcasted_iota(jnp.int32, p_t.shape, 0) + i * tile_n
    loss = jnp.where(row < n_valid, 1.0 - p_t, 0.0)

    # Independent per-tile partial sum -> the grid axis can be "parallel"
    # (both TensorCores on v7x); final tiny reduction happens in the wrapper.
    o_ref[...] = jnp.zeros(o_ref.shape, jnp.float32) + jnp.sum(loss)


def _choose_tile(n: int, c: int, itemsize: int, vmem_cap: int):
    c_pad = _round_up(c, 128)                 # lane-padded width in VMEM
    sub = max(8, 32 // itemsize)              # sublane multiple: 8 f32, 16 bf16
    # Double-buffered per-row VMEM bytes: logits tile + lane-padded (tile_n,1) targets.
    per_row = 2 * c_pad * itemsize + 2 * 128 * 4
    # Target a multi-MiB working set (amortizes ~0.35us per-grid-step overhead)
    # while staying well inside this generation's VMEM.
    budget = min(16 * 1024 * 1024, int(vmem_cap * 0.5))
    tile_n = max(sub, _round_down(max(budget // per_row, sub), sub))
    tile_n = min(tile_n, _round_up(n, sub))
    return tile_n, per_row


def unhinged_loss(logits: jax.Array, targets: jax.Array) -> jax.Array:
    """logits: (N, C) float32/bfloat16; targets: (N,) integer. Returns scalar f32."""
    n, c = logits.shape
    t2d = targets.astype(jnp.int32).reshape(n, 1)

    try:
        vmem_cap = int(pltpu.get_tpu_info().vmem_capacity_bytes)
    except Exception:
        vmem_cap = 64 * 1024 * 1024           # conservative fallback (v7x per-TC)

    itemsize = jnp.dtype(logits.dtype).itemsize
    tile_n, per_row = _choose_tile(n, c, itemsize, vmem_cap)
    num_tiles = pl.cdiv(n, tile_n)

    # TODO(synk): for C < 128, pack 128//C rows per lane-row (segmented lane
    #   reductions) to reach full lane density; matters most on v7x.
    # TODO(synk): for vocab-scale C (>=16-32k) add a second grid axis over C
    #   with an online-softmax accumulator instead of one full row per tile.

    needed = tile_n * per_row + 2 * 8 * 128 * 4        # + double-buffered out block
    vmem_limit = int(min(int(vmem_cap * 0.75),
                         max(needed + 2 * 1024 * 1024, 8 * 1024 * 1024)))

    kernel = functools.partial(_unhinged_kernel, n_valid=n)

    partials = pl.pallas_call(
        kernel,
        out_shape=jax.ShapeDtypeStruct((num_tiles, 8, 128), jnp.float32),
        grid_spec=pltpu.PrefetchScalarGridSpec(
            num_scalar_prefetch=0,
            grid=(num_tiles,),
            in_specs=[
                pl.BlockSpec((tile_n, c), lambda i: (i, 0)),
                pl.BlockSpec((tile_n, 1), lambda i: (i, 0)),
            ],
            out_specs=pl.BlockSpec((1, 8, 128), lambda i: (i, 0, 0)),
        ),
        compiler_params=pltpu.CompilerParams(
            dimension_semantics=("parallel",),
            vmem_limit_bytes=vmem_limit,
        ),
    )(logits, t2d)

    return jnp.sum(partials[:, 0, 0]) * jnp.float32(1.0 / n)


def unhinged_loss_ref(logits, targets):
    p = jax.nn.softmax(logits.astype(jnp.float32), axis=1)
    p_t = p[jnp.arange(logits.shape[0]), targets]
    return jnp.mean(1.0 - p_t)


if __name__ == "__main__":
    key = jax.random.PRNGKey(0)
    k1, k2, k3, k4 = jax.random.split(key, 4)

    # Small shape from the module spec: (minibatch, C).
    N, C = 8, 32
    logits = jax.random.normal(k1, (N, C), dtype=jnp.float32)
    targets = jax.random.randint(k2, (N,), 0, C, dtype=jnp.int32)

    out = unhinged_loss(logits, targets)
    jax.block_until_ready(out)
    ref = unhinged_loss_ref(logits, targets)
    assert jnp.allclose(out, ref, atol=1e-5, rtol=1e-5), (out, ref)

    # Larger ragged case: exercises the un-padded last block, the boolean row
    # mask, and the bf16 HBM path (upcast happens inside the kernel).
    N2, C2 = 1000, 32
    logits2 = jax.random.normal(k3, (N2, C2), dtype=jnp.float32).astype(jnp.bfloat16)
    targets2 = jax.random.randint(k4, (N2,), 0, C2, dtype=jnp.int32)

    out2 = unhinged_loss(logits2, targets2)
    jax.block_until_ready(out2)
    ref2 = unhinged_loss_ref(logits2, targets2)
    assert jnp.allclose(out2, ref2, atol=1e-4, rtol=1e-4), (out2, ref2)

    print("KERNEL_OK")
</pallas_src>

<mosaic_0001>
module attributes {stable_mosaic.version = 11 : i64} {
  func.func @_unhinged_kernel(%arg0: i32, %arg1: memref<8x32xf32, #tpu.memory_space<vmem>>, %arg2: memref<8x1xi32, #tpu.memory_space<vmem>>, %arg3: memref<1x8x128xf32, #tpu.memory_space<vmem>>) attributes {dimension_semantics = [#tpu.dimension_semantics<parallel>], iteration_bounds = array<i64: 1>, scalar_prefetch = 0 : i64, scratch_operands = 0 : i64, tpu.core_type = #tpu.core_type<tc>, window_params = [{transform_indices = @transform_0, window_bounds = array<i64: 8, 32>}, {transform_indices = @transform_1, window_bounds = array<i64: 8, 1>}, {transform_indices = @transform_2, window_bounds = array<i64: 1, 8, 128>}]} {
    %c0 = arith.constant 0 : index
    %c0_0 = arith.constant 0 : index
    %0 = vector.load %arg1[%c0, %c0_0] : memref<8x32xf32, #tpu.memory_space<vmem>>, vector<8x32xf32>
    %c0_1 = arith.constant 0 : index
    %c0_2 = arith.constant 0 : index
    %1 = vector.load %arg2[%c0_1, %c0_2] : memref<8x1xi32, #tpu.memory_space<vmem>>, vector<8x1xi32>
    %cst = arith.constant dense<0xFF800000> : vector<8xf32>
    %2 = vector.multi_reduction <maximumf>, %0, %cst [1] : vector<8x32xf32> to vector<8xf32>
    %3 = vector.shape_cast %2 : vector<8xf32> to vector<8x1xf32>
    %4 = vector.broadcast %3 : vector<8x1xf32> to vector<8x32xf32>
    %5 = arith.subf %0, %4 : vector<8x32xf32>
    %6 = math.exp %5 : vector<8x32xf32>
    %cst_3 = arith.constant dense<0.000000e+00> : vector<8xf32>
    %7 = vector.multi_reduction <add>, %6, %cst_3 [1] : vector<8x32xf32> to vector<8xf32>
    %8 = vector.shape_cast %7 : vector<8xf32> to vector<8x1xf32>
    %9 = tpu.iota {dimensions = array<i32: 1>} : vector<8x32xi32>
    %10 = vector.broadcast %1 : vector<8x1xi32> to vector<8x32xi32>
    %11 = arith.cmpi eq, %9, %10 : vector<8x32xi32>
    %cst_4 = arith.constant 0.000000e+00 : f32
    %12 = vector.broadcast %cst_4 : f32 to vector<8x32xf32>
    %13 = arith.select %11, %6, %12 : vector<8x32xi1>, vector<8x32xf32>
    %cst_5 = arith.constant dense<0.000000e+00> : vector<8xf32>
    %14 = vector.multi_reduction <add>, %13, %cst_5 [1] : vector<8x32xf32> to vector<8xf32>
    %15 = vector.shape_cast %14 : vector<8xf32> to vector<8x1xf32>
    %16 = tpu.reciprocal %8 : vector<8x1xf32> -> vector<8x1xf32>
    %17 = arith.mulf %15, %16 : vector<8x1xf32>
    %18 = tpu.iota {dimensions = array<i32: 0>} : vector<8x1xi32>
    %c8_i32 = arith.constant 8 : i32
    %19 = arith.muli %arg0, %c8_i32 : i32
    %20 = vector.broadcast %19 : i32 to vector<8x1xi32>
    %21 = arith.addi %18, %20 : vector<8x1xi32>
    %c8_i32_6 = arith.constant 8 : i32
    %22 = vector.broadcast %c8_i32_6 : i32 to vector<8x1xi32>
    %23 = arith.cmpi slt, %21, %22 : vector<8x1xi32>
    %cst_7 = arith.constant 1.000000e+00 : f32
    %24 = vector.broadcast %cst_7 : f32 to vector<8x1xf32>
    %25 = arith.subf %24, %17 : vector<8x1xf32>
    %cst_8 = arith.constant 0.000000e+00 : f32
    %26 = vector.broadcast %cst_8 : f32 to vector<8x1xf32>
    %27 = arith.select %23, %25, %26 : vector<8x1xi1>, vector<8x1xf32>
    %cst_9 = arith.constant 0.000000e+00 : f32
    %28 = vector.broadcast %cst_9 : f32 to vector<1x8x128xf32>
    %29 = vector.shape_cast %27 : vector<8x1xf32> to vector<1x8x1xf32>
    %cst_10 = arith.constant dense<0.000000e+00> : vector<1xf32>
    %30 = vector.multi_reduction <add>, %29, %cst_10 [1, 2] : vector<1x8x1xf32> to vector<1xf32>
    %31 = vector.shape_cast %30 : vector<1xf32> to vector<1x1x1xf32>
    %32 = vector.extract %31[0, 0, 0] : f32 from vector<1x1x1xf32>
    %33 = vector.broadcast %32 : f32 to vector<1x8x128xf32>
    %34 = arith.addf %28, %33 : vector<1x8x128xf32>
    %c0_11 = arith.constant 0 : index
    %c0_12 = arith.constant 0 : index
    %c0_13 = arith.constant 0 : index
    %35 = vector.load %arg3[%c0_11, %c0_12, %c0_13] : memref<1x8x128xf32, #tpu.memory_space<vmem>>, vector<1x8x128xf32>
    tpu.vector_store %arg3[%c0_11, %c0_12, %c0_13], %34 {strides = array<i32>} : memref<1x8x128xf32, #tpu.memory_space<vmem>>, vector<1x8x128xf32>,
    return
  }
  func.func @transform_0(%arg0: i32) -> (i32, i32) {
    %c0_i32 = arith.constant 0 : i32
    %c0_i32_0 = arith.constant 0 : i32
    return %arg0, %c0_i32 : i32, i32
  }
  func.func @transform_1(%arg0: i32) -> (i32, i32) {
    %c0_i32 = arith.constant 0 : i32
    %c0_i32_0 = arith.constant 0 : i32
    return %arg0, %c0_i32 : i32, i32
  }
  func.func @transform_2(%arg0: i32) -> (i32, i32, i32) {
    %c0_i32 = arith.constant 0 : i32
    %c0_i32_0 = arith.constant 0 : i32
    %c0_i32_1 = arith.constant 0 : i32
    return %arg0, %c0_i32, %c0_i32_0 : i32, i32, i32
  }
}

</mosaic_0001>

<bundles_post_ra>
// kernel: tpu_custom_call.1
= control target key start
LH: loop header
LB: loop body
LE: loop exit
PB: predicated region body
PF: predicated region fallthrough
CT: control target
= control target key end

     0   :  { %vm14_vm0 = vcmask 261120   ;;  %s151_s0 = inlined_call_operand.vmem [shape: f32[8,32], index: 0, kind: input, shape index: {}]   ;;  %s152_s1 = inlined_call_operand.vmem [shape: s32[8,1], index: 1, kind: input, shape index: {}]   ;;  %s153_s2 = inlined_call_operand.hbm [shape: f32[1,8,128], index: 2, kind: output, shape index: {}]  }
   0x1   :  { %v12_v0 = vld [vmem:[%s151_s0] sm:$0xff] }
   0x2   :  { %7 = vsyncpa [#allocation3], 0  ;;  %v15_v1 = vsel %vm14_vm0, %v12_v0, -inf  ;;  %v122_v2 = vmov 0   ;;  %v13_v3 = vld [vmem:[%s152_s1] sm:$0xff]  ;;  %v24_v9 = vlaneseq  ;;  %vm57_vm6 = vcmask 7168  }
   0x3   :  { %91 = vset.pattern.permute.xlu0 %v122_v2  ;;  %s123_s0 = smov [#allocation2]   ;;  %s78_s15 = sshll.u32 %s153_s2, 4  ;;  %s79_s15 = int_to_ptr.hbm [resolvable:$true] %s78_s15 }
   0x4   :  { %16 = vmax.xlane.f32.xlu0 %v15_v1  ;;  %v25_v10 = vand.u32 127, %v24_v9  ;;  %s76_s1 = sshll.u32 %s123_s0, 4  ;;  %s77_s1 = int_to_ptr.vmem [resolvable:$true] %s76_s1 }
  0x18   :  { %27 = vperm.xlu0 %91, %v13_v3  }
  0x77   :  { %v17_v4 = vpop.xlane.xlu0 %16 }
  0x78   :  { %v18_v5 = vsub.f32 %v12_v0, %v17_v4 }
  0x7a   :  { %v19_v6 = vmul.f32 1.442695, %v18_v5 }
  0x7c   :  { %92 = vpow2.f32 %v19_v6 }
  0x82   :  { %v93_v7 = vpop.eup %92 }
  0x83   :  { %v21_v8 = vsel %vm14_vm0, %v93_v7, 0.0 }
  0x84   :  { %22 = vadd.xlane.f32.xlu1 %v21_v8 }
  0x8a   :  { %v28_v11 = vpop.permute.xlu0 %27 }
  0x8b   :  { %vm29_vm1 = vcmp.eq.s32.totalorder %v25_v10, %v28_v11 }
  0x8c   :  { %v30_v12 = vsel %vm29_vm1, %v93_v7, 0.0 }
  0x8d   :  { %v31_v13 = vsel %vm14_vm0, %v30_v12, 0.0 }
  0x8e   :  { %32 = vadd.xlane.f32.xlu1 %v31_v13 }
  0xf7   :  { %v23_v14 = vpop.xlane.xlu1 %22 }
  0xf8   :  { %94 = vrcp.f32 %v23_v14  ;;  %v45_v18 = vand.u32 2147483648, %v23_v14  ;;  %v43_v20 = vand.u32 2147483647, %v23_v14  ;;  %vm39_vm3 = vweird.f32 %v23_v14 }
  0xfa   :  { %v46_v22 = vor.u32 1.1754944e-38, %v45_v18  ;;  %vm44_vm5 = vcmp.eq.f32.partialorder %v43_v20, 8.507059e+37 }
  0xfe   :  { %v95_v15 = vpop.eup %94 }
  0xff   :  { %v35_v16 = vmul.f32 %v95_v15, %v23_v14  ;;  %vm40_vm2 = vweird.f32 %v95_v15 }
 0x100   :  { %vm41_vm4 = vmor %vm39_vm3, %vm40_vm2 }
 0x101   :  { %v36_v17 = vsub.f32 1.0, %v35_v16  ;;  %v33_v25 = vpop.xlane.xlu1 %32 }
 0x103   :  { %v37_v19 = vmul.f32 %v95_v15, %v36_v17 }
 0x105   :  { %v38_v21 = vadd.f32 %v95_v15, %v37_v19 }
 0x107   :  { %v42_v23 = vsel %vm41_vm4, %v95_v15, %v38_v21 }
 0x108   :  { %v47_v24 = vsel %vm44_vm5, %v46_v22, %v42_v23 }
 0x109   :  { %v48_v26 = vmul.f32 %v47_v24, %v33_v25 }
 0x10b   :  { %v55_v27 = vsub.f32 1.0, %v48_v26 }
 0x10d   :  { %v58_v28 = vsel %vm57_vm6, %v55_v27, 0.0 }
 0x10e   :  { %59 = vadd.xlane.f32.xlu2 %v58_v28 }
 0x181   :  { %v60_v29 = vpop.xlane.xlu2 %59 }
 0x182   :  { %v61_v30 = vrot.slane %v60_v29, 4 }
 0x184   :  { %v62_v31 = vadd.f32 %v61_v30, %v60_v29 }
 0x186   :  { %v63_v32 = vrot.slane %v62_v31, 2 }
 0x188   :  { %v64_v33 = vadd.f32 %v63_v32, %v62_v31 }
 0x18a   :  { %v65_v34 = vrot.slane %v64_v33, 1 }
 0x18c   :  { %v66_v35 = vadd.f32 %v65_v34, %v64_v33 }
 0x18e   :  { %87 = vpush %v66_v35 }
 0x1bf   :  { %s88_s16 = spop %87 }
 0x1c0   :  { %v68_v36 = vstv %s88_s16 }
 0x1c1   :  { %70 = vst [vmem:[#allocation2] sm:$0xff] %v68_v36 }
 0x1c2   :  { %81 = dma.vmem_to_hbm [thread:$0]  %s77_s1, 128, %s79_s15, [#allocation3]  }
 0x1c3   :  { %120 = dma.done.wait [#allocation3], 128  }
 0x1c4   :  { %121 = vsyncadd [#allocation3], 4294967168 }
 0x1c5   :  { %86 = vsyncpa [#allocation3], 1 }

</bundles_post_ra>
